<compile_context>
chip_gen: v6e
topology: v6e:2x2x1
jax: 0.10.0
libtpu: 0.0.40
codegen_flags: <defaults>
</compile_context>

<pallas_src>
import jax
import jax.numpy as jnp
from jax.experimental import pallas as pl
from jax.experimental.pallas import tpu as pltpu

# ----------------------------- model config --------------------------------
B = 2          # batch
S = 8          # seq_length
E = 32         # embed_dim (768 in the real model; small toy size here)
HID = 80       # hidden_size (module default)
LN_EPS = 1e-5  # nn.LayerNorm default eps
MAX_TM = 512   # row-tile size for large B*S


def _round_up(x, m):
    return (x + m - 1) // m * m


# ------------------------------ Pallas kernel -------------------------------
def _mapping_mlp2_kernel(x_ref, w1_ref, b1_ref, g_ref, beta_ref,
                         w2_ref, b2_ref, out_ref):
    x = x_ref[...]                                                     # [TM, E]

    # ---- net1: Linear -> LayerNorm -> ReLU ----
    h = jnp.dot(x, w1_ref[...], preferred_element_type=jnp.float32) + b1_ref[...]
    mu = jnp.mean(h, axis=-1, keepdims=True)
    var = jnp.mean((h - mu) ** 2, axis=-1, keepdims=True)
    h = (h - mu) * jax.lax.rsqrt(var + LN_EPS) * g_ref[...] + beta_ref[...]
    h = jnp.maximum(h, 0.0)

    # ---- net2: Linear -> Sigmoid ----
    y = jnp.dot(h, w2_ref[...], preferred_element_type=jnp.float32) + b2_ref[...]
    # sigmoid = 1 / (1 + exp(-y)); exp and approx reciprocal both run on the EUP.
    out_ref[...] = (pl.reciprocal(1.0 + jnp.exp(-y), approx=True)).astype(out_ref.dtype)


# ------------------------------ JAX wrapper ---------------------------------
def init_params(key):
    # Matches nn.Linear default init (uniform +/- 1/sqrt(fan_in)); LayerNorm affine = (1, 0).
    k1, k2, k3, k4 = jax.random.split(key, 4)
    lim1 = 1.0 / float(jnp.sqrt(jnp.float32(E)))
    lim2 = 1.0 / float(jnp.sqrt(jnp.float32(HID)))
    return {
        "w1":   jax.random.uniform(k1, (E, HID), jnp.float32, -lim1, lim1),
        "b1":   jax.random.uniform(k2, (1, HID), jnp.float32, -lim1, lim1),
        "ln_g": jnp.ones((1, HID), jnp.float32),
        "ln_b": jnp.zeros((1, HID), jnp.float32),
        "w2":   jax.random.uniform(k3, (HID, E), jnp.float32, -lim2, lim2),
        "b2":   jax.random.uniform(k4, (1, E), jnp.float32, -lim2, lim2),
    }


@jax.jit
def mapping_mlp2_forward(x, params):
    b, s, e = x.shape
    hid = params["w1"].shape[1]
    rows = b * s
    x2d = x.reshape(rows, e)                     # fold batch+seq -> rows

    # Row tiling: single resident block when small, MAX_TM-row tiles when large.
    tm = _round_up(rows, 8) if rows <= MAX_TM else MAX_TM
    rows_p = _round_up(rows, tm)
    if rows_p != rows:
        x2d = jnp.pad(x2d, ((0, rows_p - rows), (0, 0)))
    grid_m = rows_p // tm

    args = (x2d, params["w1"], params["b1"], params["ln_g"], params["ln_b"],
            params["w2"], params["b2"])

    flops = 2 * rows_p * e * hid + 2 * rows_p * hid * e + 10 * rows_p * (hid + e)
    bytes_accessed = 4 * (sum(int(a.size) for a in args) + rows_p * e)

    out2d = pl.pallas_call(
        _mapping_mlp2_kernel,
        out_shape=jax.ShapeDtypeStruct((rows_p, e), jnp.float32),
        grid=(grid_m,),
        in_specs=[
            pl.BlockSpec((tm, e), lambda i: (i, 0)),     # activations (row tile)
            pl.BlockSpec((e, hid), lambda i: (0, 0)),    # w1 (resident, no re-DMA)
            pl.BlockSpec((1, hid), lambda i: (0, 0)),    # b1
            pl.BlockSpec((1, hid), lambda i: (0, 0)),    # LayerNorm gamma
            pl.BlockSpec((1, hid), lambda i: (0, 0)),    # LayerNorm beta
            pl.BlockSpec((hid, e), lambda i: (0, 0)),    # w2
            pl.BlockSpec((1, e), lambda i: (0, 0)),      # b2
        ],
        out_specs=pl.BlockSpec((tm, e), lambda i: (i, 0)),
        compiler_params=pltpu.CompilerParams(dimension_semantics=("parallel",)),
        cost_estimate=pl.CostEstimate(
            flops=flops,
            transcendentals=rows_p * (hid + e),
            bytes_accessed=bytes_accessed,
        ),
    )(*args)

    return out2d[:rows].reshape(b, s, e)


# Pure-JAX reference (mirrors the PyTorch forward) for a sanity check.
def _reference_forward(x, params):
    h = x @ params["w1"] + params["b1"][0]
    mu = h.mean(-1, keepdims=True)
    var = ((h - mu) ** 2).mean(-1, keepdims=True)
    h = (h - mu) / jnp.sqrt(var + LN_EPS) * params["ln_g"][0] + params["ln_b"][0]
    h = jnp.maximum(h, 0.0)
    y = h @ params["w2"] + params["b2"][0]
    return jax.nn.sigmoid(y)


# --------------------------------- main --------------------------------------
if __name__ == "__main__":
    key = jax.random.PRNGKey(0)
    pkey, xkey = jax.random.split(key)
    params = init_params(pkey)

    x = jax.random.normal(xkey, (B, S, E), jnp.float32)

    out = mapping_mlp2_forward(x, params)
    jax.block_until_ready(out)

    assert out.shape == (B, S, E)
    ref = _reference_forward(x, params)
    assert bool(jnp.all(jnp.isfinite(out)))
    assert bool(jnp.allclose(out, ref, rtol=1e-2, atol=1e-2))
    print("KERNEL_OK")
</pallas_src>

<mosaic_0001>
module attributes {stable_mosaic.version = 11 : i64} {
  func.func @_mapping_mlp2_kernel(%arg0: i32, %arg1: memref<16x32xf32, #tpu.memory_space<vmem>>, %arg2: memref<32x80xf32, #tpu.memory_space<vmem>>, %arg3: memref<1x80xf32, #tpu.memory_space<vmem>>, %arg4: memref<1x80xf32, #tpu.memory_space<vmem>>, %arg5: memref<1x80xf32, #tpu.memory_space<vmem>>, %arg6: memref<80x32xf32, #tpu.memory_space<vmem>>, %arg7: memref<1x32xf32, #tpu.memory_space<vmem>>, %arg8: memref<16x32xf32, #tpu.memory_space<vmem>>) attributes {dimension_semantics = [#tpu.dimension_semantics<parallel>], iteration_bounds = array<i64: 1>, scalar_prefetch = 0 : i64, scratch_operands = 0 : i64, tpu.core_type = #tpu.core_type<tc>, window_params = [{transform_indices = @transform_0, window_bounds = array<i64: 16, 32>}, {pipeline_mode = #tpu.pipeline_mode<synchronous>, transform_indices = @transform_1, window_bounds = array<i64: 32, 80>}, {pipeline_mode = #tpu.pipeline_mode<synchronous>, transform_indices = @transform_2, window_bounds = array<i64: 1, 80>}, {pipeline_mode = #tpu.pipeline_mode<synchronous>, transform_indices = @transform_3, window_bounds = array<i64: 1, 80>}, {pipeline_mode = #tpu.pipeline_mode<synchronous>, transform_indices = @transform_4, window_bounds = array<i64: 1, 80>}, {pipeline_mode = #tpu.pipeline_mode<synchronous>, transform_indices = @transform_5, window_bounds = array<i64: 80, 32>}, {pipeline_mode = #tpu.pipeline_mode<synchronous>, transform_indices = @transform_6, window_bounds = array<i64: 1, 32>}, {transform_indices = @transform_7, window_bounds = array<i64: 16, 32>}]} {
    %c0 = arith.constant 0 : index
    %c0_0 = arith.constant 0 : index
    %0 = vector.load %arg1[%c0, %c0_0] : memref<16x32xf32, #tpu.memory_space<vmem>>, vector<16x32xf32>
    %c0_1 = arith.constant 0 : index
    %c0_2 = arith.constant 0 : index
    %1 = vector.load %arg2[%c0_1, %c0_2] : memref<32x80xf32, #tpu.memory_space<vmem>>, vector<32x80xf32>
    %cst = arith.constant dense<0.000000e+00> : vector<16x80xf32>
    %2 = tpu.matmul %0, %1, %cst {dimension_numbers = #tpu.dot_dimension_numbers<[1], [0], [0], [1], [0, 0, 1, 1], [], []>} : vector<16x32xf32>, vector<32x80xf32>, vector<16x80xf32> -> vector<16x80xf32>
    %c0_3 = arith.constant 0 : index
    %c0_4 = arith.constant 0 : index
    %3 = vector.load %arg3[%c0_3, %c0_4] : memref<1x80xf32, #tpu.memory_space<vmem>>, vector<1x80xf32>
    %4 = vector.broadcast %3 : vector<1x80xf32> to vector<16x80xf32>
    %5 = arith.addf %2, %4 : vector<16x80xf32>
    %cst_5 = arith.constant dense<0.000000e+00> : vector<16xf32>
    %6 = vector.multi_reduction <add>, %5, %cst_5 [1] : vector<16x80xf32> to vector<16xf32>
    %7 = vector.shape_cast %6 : vector<16xf32> to vector<16x1xf32>
    %cst_6 = arith.constant 8.000000e+01 : f32
    %8 = vector.broadcast %cst_6 : f32 to vector<16x1xf32>
    %9 = arith.divf %7, %8 : vector<16x1xf32>
    %10 = vector.broadcast %9 : vector<16x1xf32> to vector<16x80xf32>
    %11 = arith.subf %5, %10 : vector<16x80xf32>
    %12 = arith.mulf %11, %11 : vector<16x80xf32>
    %cst_7 = arith.constant dense<0.000000e+00> : vector<16xf32>
    %13 = vector.multi_reduction <add>, %12, %cst_7 [1] : vector<16x80xf32> to vector<16xf32>
    %14 = vector.shape_cast %13 : vector<16xf32> to vector<16x1xf32>
    %cst_8 = arith.constant 8.000000e+01 : f32
    %15 = vector.broadcast %cst_8 : f32 to vector<16x1xf32>
    %16 = arith.divf %14, %15 : vector<16x1xf32>
    %17 = vector.broadcast %9 : vector<16x1xf32> to vector<16x80xf32>
    %18 = arith.subf %5, %17 : vector<16x80xf32>
    %cst_9 = arith.constant 9.99999974E-6 : f32
    %19 = vector.broadcast %cst_9 : f32 to vector<16x1xf32>
    %20 = arith.addf %16, %19 : vector<16x1xf32>
    %21 = math.rsqrt %20 : vector<16x1xf32>
    %22 = vector.broadcast %21 : vector<16x1xf32> to vector<16x80xf32>
    %23 = arith.mulf %18, %22 : vector<16x80xf32>
    %c0_10 = arith.constant 0 : index
    %c0_11 = arith.constant 0 : index
    %24 = vector.load %arg4[%c0_10, %c0_11] : memref<1x80xf32, #tpu.memory_space<vmem>>, vector<1x80xf32>
    %25 = vector.broadcast %24 : vector<1x80xf32> to vector<16x80xf32>
    %26 = arith.mulf %23, %25 : vector<16x80xf32>
    %c0_12 = arith.constant 0 : index
    %c0_13 = arith.constant 0 : index
    %27 = vector.load %arg5[%c0_12, %c0_13] : memref<1x80xf32, #tpu.memory_space<vmem>>, vector<1x80xf32>
    %28 = vector.broadcast %27 : vector<1x80xf32> to vector<16x80xf32>
    %29 = arith.addf %26, %28 : vector<16x80xf32>
    %cst_14 = arith.constant 0.000000e+00 : f32
    %30 = vector.broadcast %cst_14 : f32 to vector<16x80xf32>
    %31 = arith.maximumf %29, %30 : vector<16x80xf32>
    %c0_15 = arith.constant 0 : index
    %c0_16 = arith.constant 0 : index
    %32 = vector.load %arg6[%c0_15, %c0_16] : memref<80x32xf32, #tpu.memory_space<vmem>>, vector<80x32xf32>
    %cst_17 = arith.constant dense<0.000000e+00> : vector<16x32xf32>
    %33 = tpu.matmul %31, %32, %cst_17 {dimension_numbers = #tpu.dot_dimension_numbers<[1], [0], [0], [1], [0, 0, 1, 1], [], []>} : vector<16x80xf32>, vector<80x32xf32>, vector<16x32xf32> -> vector<16x32xf32>
    %c0_18 = arith.constant 0 : index
    %c0_19 = arith.constant 0 : index
    %34 = vector.load %arg7[%c0_18, %c0_19] : memref<1x32xf32, #tpu.memory_space<vmem>>, vector<1x32xf32>
    %35 = vector.broadcast %34 : vector<1x32xf32> to vector<16x32xf32>
    %36 = arith.addf %33, %35 : vector<16x32xf32>
    %cst_20 = arith.constant 0.000000e+00 : f32
    %37 = vector.broadcast %cst_20 : f32 to vector<16x32xf32>
    %38 = arith.subf %37, %36 : vector<16x32xf32>
    %39 = math.exp %38 : vector<16x32xf32>
    %cst_21 = arith.constant 1.000000e+00 : f32
    %40 = vector.broadcast %cst_21 : f32 to vector<16x32xf32>
    %41 = arith.addf %40, %39 : vector<16x32xf32>
    %42 = tpu.reciprocal %41 {approx = true} : vector<16x32xf32> -> vector<16x32xf32>
    %c0_22 = arith.constant 0 : index
    %c0_23 = arith.constant 0 : index
    %43 = vector.load %arg8[%c0_22, %c0_23] : memref<16x32xf32, #tpu.memory_space<vmem>>, vector<16x32xf32>
    tpu.vector_store %arg8[%c0_22, %c0_23], %42 {strides = array<i32>} : memref<16x32xf32, #tpu.memory_space<vmem>>, vector<16x32xf32>,
    return
  }
  func.func @transform_0(%arg0: i32) -> (i32, i32) {
    %c0_i32 = arith.constant 0 : i32
    %c0_i32_0 = arith.constant 0 : i32
    return %arg0, %c0_i32 : i32, i32
  }
  func.func @transform_1(%arg0: i32) -> (i32, i32) {
    %c0_i32 = arith.constant 0 : i32
    %c0_i32_0 = arith.constant 0 : i32
    %c0_i32_1 = arith.constant 0 : i32
    return %c0_i32, %c0_i32_0 : i32, i32
  }
  func.func @transform_2(%arg0: i32) -> (i32, i32) {
    %c0_i32 = arith.constant 0 : i32
    %c0_i32_0 = arith.constant 0 : i32
    %c0_i32_1 = arith.constant 0 : i32
    return %c0_i32, %c0_i32_0 : i32, i32
  }
  func.func @transform_3(%arg0: i32) -> (i32, i32) {
    %c0_i32 = arith.constant 0 : i32
    %c0_i32_0 = arith.constant 0 : i32
    %c0_i32_1 = arith.constant 0 : i32
    return %c0_i32, %c0_i32_0 : i32, i32
  }
  func.func @transform_4(%arg0: i32) -> (i32, i32) {
    %c0_i32 = arith.constant 0 : i32
    %c0_i32_0 = arith.constant 0 : i32
    %c0_i32_1 = arith.constant 0 : i32
    return %c0_i32, %c0_i32_0 : i32, i32
  }
  func.func @transform_5(%arg0: i32) -> (i32, i32) {
    %c0_i32 = arith.constant 0 : i32
    %c0_i32_0 = arith.constant 0 : i32
    %c0_i32_1 = arith.constant 0 : i32
    return %c0_i32, %c0_i32_0 : i32, i32
  }
  func.func @transform_6(%arg0: i32) -> (i32, i32) {
    %c0_i32 = arith.constant 0 : i32
    %c0_i32_0 = arith.constant 0 : i32
    %c0_i32_1 = arith.constant 0 : i32
    return %c0_i32, %c0_i32_0 : i32, i32
  }
  func.func @transform_7(%arg0: i32) -> (i32, i32) {
    %c0_i32 = arith.constant 0 : i32
    %c0_i32_0 = arith.constant 0 : i32
    return %arg0, %c0_i32 : i32, i32
  }
}

</mosaic_0001>

<bundles_post_ra>
// kernel: mapping_mlp2_forward.1
= control target key start
LH: loop header
LB: loop body
LE: loop exit
PB: predicated region body
PF: predicated region fallthrough
CT: control target
= control target key end

     0   :  { %vm40_vm0 = vcmask 261120   ;;  %s509_s0 = inlined_call_operand.vmem [shape: f32[16,32], index: 0, kind: input, shape index: {}]   ;;  %s510_s1 = inlined_call_operand.vmem [shape: f32[32,80], index: 1, kind: input, shape index: {}]   ;;  %s511_s2 = inlined_call_operand.vmem [shape: f32[1,80], index: 2, kind: input, shape index: {}]   ;;  %s512_s3 = inlined_call_operand.vmem [shape: f32[1,80], index: 3, kind: input, shape index: {}]   ;;  %s513_s4 = inlined_call_operand.vmem [shape: f32[1,80], index: 4, kind: input, shape index: {}]   ;;  %s514_s5 = inlined_call_operand.vmem [shape: f32[80,32], index: 5, kind: input, shape index: {}]   ;;  %s515_s6 = inlined_call_operand.vmem [shape: f32[1,32], index: 6, kind: input, shape index: {}]   ;;  %s516_s7 = inlined_call_operand.hbm [shape: f32[16,32], index: 7, kind: output, shape index: {}]  }
   0x1   :  { %v32_v0 = vld [vmem:[%s510_s1 + $0x18] sm:$0xff]  ;;  %v31_v1 = vld [vmem:[%s510_s1 + $0x10] sm:$0xff]  ;;  %v27_v2 = vld [vmem:[%s509_s0] sm:$0xff] }
   0x2   :  { %322 = vmatprep.subr.mxu0 %v32_v0  ;;  %v30_v3 = vld [vmem:[%s510_s1 + $0x8] sm:$0xff]  ;;  %330 = vmatprep.mubr.msk.f32.mxu0 %vm40_vm0, %v27_v2 }
   0x3   :  { %323 = vmatpush3.msra.mxu0 %v32_v0 }
   0x4   :  { %12 = vsyncpa [#allocation3], 0  ;;  %324 = vmatprep.subr.mxu0 %v31_v1  ;;  %v29_v4 = vld [vmem:[%s510_s1] sm:$0xff]  ;;  %v28_v5 = vld [vmem:[%s509_s0 + $0x8] sm:$0xff]  ;;  %vm122_vm1 = vcmask 654336  }
   0x5   :  { %325 = vmatpush3.msra.mxu0 %v31_v1  ;;  %v296_v7 = vld [vmem:[%s511_s2] ss:$0 sm:$0xff]  ;;  %v179_v23 = vld [vmem:[%s514_s5 + $0x48] sm:$0xff]  ;;  %v177_v25 = vld [vmem:[%s514_s5 + $0x38] sm:$0xff] }
   0x6   :  { %326 = vmatprep.subr.mxu0 %v30_v3  ;;  %v178_v24 = vld [vmem:[%s514_s5 + $0x40] sm:$0xff]  ;;  %333 = vmatprep.subr.mxu1 %v179_v23  ;;  %v176_v26 = vld [vmem:[%s514_s5 + $0x30] sm:$0xff]  ;;  %v175_v27 = vld [vmem:[%s514_s5 + $0x28] sm:$0xff] }
   0x7   :  { %327 = vmatpush3.msra.mxu0 %v30_v3  ;;  %334 = vmatpush3.msra.mxu1 %v179_v23  ;;  %v174_v28 = vld [vmem:[%s514_s5 + $0x20] sm:$0xff]  ;;  %v173_v29 = vld [vmem:[%s514_s5 + $0x18] sm:$0xff]  ;;  %v172_v30 = vld [vmem:[%s514_s5 + $0x10] sm:$0xff] }
   0x8   :  { %328 = vmatprep.subr.mxu0 %v29_v4  ;;  %335 = vmatprep.subr.mxu1 %v178_v24  ;;  %v171_v31 = vld [vmem:[%s514_s5 + $0x8] sm:$0xff]  ;;  %v170_v32 = vld [vmem:[%s514_s5] sm:$0xff] }
   0x9   :  { %329 = vmatpush3.msra.mxu0 %v29_v4  ;;  %336 = vmatpush3.msra.mxu1 %v178_v24  ;;  %v299_v40 = vld [vmem:[%s512_s3] ss:$0 sm:$0xff]  ;;  %s393_s3 = smov [#allocation2]  }
   0xa   :  { %331 = vmatmul.mubr.msk.f32.vlgmr.msra.gmra.mxu0 %vm40_vm0, %v28_v5  ;;  %337 = vmatprep.subr.mxu1 %v177_v25  ;;  %v300_v42 = vld [vmem:[%s513_s4] ss:$0 sm:$0xff]  ;;  %s285_s4 = sshll.u32 %s393_s3, 4  ;;  %s286_s4 = int_to_ptr.vmem [resolvable:$true] %s285_s4 }
   0xb   :  { %338 = vmatpush3.msra.mxu1 %v177_v25  ;;  %v301_v51 = vld [vmem:[%s515_s6] ss:$0 sm:$0xff]  ;;  %s371_s6 = scalar_lea.vmem %s286_s4, 256  ;;  %p376_p1 = scmp.lt.s32.totalorder %s286_s4, %s286_s4 }
   0xc   :  { %339 = vmatprep.subr.mxu1 %v176_v26  ;;  %p372_p0 = scmp.ne.s32.totalorder %s286_s4, %s371_s6  ;;  %p377_p2 = scmp.lt.s32.totalorder %s371_s6, %s371_s6 }
   0xd   :  { %340 = vmatpush3.msra.mxu1 %v176_v26 }
   0xe   :  { %341 = vmatprep.subr.mxu1 %v175_v27  ;;  %p378_p3 = por %p377_p2, %p376_p1 }
   0xf   :  { %342 = vmatpush3.msra.mxu1 %v175_v27 }
  0x10   :  { %343 = vmatprep.subr.mxu1 %v174_v28  ;;  %p379_p4 = pnand %p378_p3, %p372_p0 }
  0x11   :  { %344 = vmatpush3.msra.mxu1 %v174_v28 }
  0x12   :  { %345 = vmatprep.subr.mxu1 %v173_v29 }
  0x13   :  { %346 = vmatpush3.msra.mxu1 %v173_v29 }
  0x14   :  { %347 = vmatprep.subr.mxu1 %v172_v30 }
  0x15   :  { %348 = vmatpush3.msra.mxu1 %v172_v30 }
  0x16   :  { %349 = vmatprep.subr.mxu1 %v171_v31 }
  0x17   :  { %350 = vmatpush3.msra.mxu1 %v171_v31 }
  0x18   :  { %351 = vmatprep.subr.mxu1 %v170_v32 }
  0x19   :  { %352 = vmatpush3.msra.mxu1 %v170_v32 }
  0xca   :  { %v332_v6 = vpop.f32.mrf.mxu0 }
  0xcb   :  { %v119_v10 = vadd.f32 %v332_v6, %v296_v7 }
  0xcc   :  { %v113_v8 = vpop.f32.mrf.mxu0 }
  0xcd   :  { %v114_v9 = vadd.f32 %v296_v7, %v113_v8  ;;  %v126_v12 = vsel %vm122_vm1, %v119_v10, 0.0 }
  0xcf   :  { %v123_v11 = vsel %vm122_vm1, %v114_v9, 0.0 }
  0xd0   :  { %124 = vadd.xlane.f32.xlu0 %v123_v11 }
  0xd4   :  { %127 = vadd.xlane.f32.xlu0 %v126_v12 }
 0x159   :  { %v125_v13 = vpop.xlane.xlu0 %124 }
 0x15a   :  { %v130_v14 = vmul.f32 0.0125, %v125_v13 }
 0x15c   :  { %v132_v15 = vsub.f32 %v114_v9, %v130_v14 }
 0x15d   :  { %v128_v16 = vpop.xlane.xlu0 %127 }
 0x15e   :  { %v131_v17 = vmul.f32 0.0125, %v128_v16  ;;  %v134_v18 = vmul.f32 %v132_v15, %v132_v15 }
 0x160   :  { %v133_v19 = vsub.f32 %v119_v10, %v131_v17  ;;  %v136_v20 = vsel %vm122_vm1, %v134_v18, 0.0 }
 0x161   :  { %137 = vadd.xlane.f32.xlu1 %v136_v20 }
 0x162   :  { %v135_v21 = vmul.f32 %v133_v19, %v133_v19 }
 0x164   :  { %v139_v22 = vsel %vm122_vm1, %v135_v21, 0.0 }
 0x165   :  { %140 = vadd.xlane.f32.xlu1 %v139_v22 }
 0x1ea   :  { %v138_v33 = vpop.xlane.xlu1 %137 }
 0x1eb   :  { %v142_v34 = vmul.f32 0.0125, %v138_v33 }
 0x1ed   :  { %v144_v35 = vadd.f32 1e-05, %v142_v34 }
 0x1ee   :  { %v141_v36 = vpop.xlane.xlu1 %140 }
 0x1ef   :  { %359 = vrsqrt.f32 %v144_v35  ;;  %v143_v37 = vmul.f32 0.0125, %v141_v36 }
 0x1f1   :  { %v145_v38 = vadd.f32 1e-05, %v143_v37 }
 0x1f3   :  { %361 = vrsqrt.f32 %v145_v38 }
 0x1fc   :  { %v360_v39 = vpop.eup %359 }
 0x1fd   :  { %v148_v41 = vmul.f32 %v360_v39, %v132_v15 }
 0x1ff   :  { %v157_v43 = vmul.f32 %v299_v40, %v148_v41 }
 0x200   :  { %v362_v44 = vpop.eup %361 }
 0x201   :  { %v149_v45 = vmul.f32 %v362_v44, %v133_v19  ;;  %v166_v46 = vadd.f32 %v300_v42, %v157_v43 }
 0x203   :  { %v158_v47 = vmul.f32 %v299_v40, %v149_v45  ;;  %v168_v48 = vmax.f32 %v166_v46, 0.0 }
 0x205   :  { %v167_v49 = vadd.f32 %v300_v42, %v158_v47  ;;  %353 = vmatprep.mubr.msk.f32.mxu1 %vm122_vm1, %v168_v48 }
 0x207   :  { %v169_v50 = vmax.f32 %v167_v49, 0.0 }
 0x209   :  { %354 = vmatmul.mubr.msk.f32.vlgmr.msra.gmra.mxu1 %vm122_vm1, %v169_v50 }
 0x2c9   :  { %v355_v52 = vpop.f32.mrf.mxu1 }
 0x2ca   :  { %v265_v53 = vadd.f32 %v355_v52, %v301_v51 }
 0x2cb   :  { %v259_v54 = vpop.f32.mrf.mxu1 }
 0x2cc   :  { %v269_v55 = vsub.f32 0.0, %v265_v53  ;;  %v260_v56 = vadd.f32 %v301_v51, %v259_v54 }
 0x2ce   :  { %v272_v57 = vmul.f32 1.442695, %v269_v55  ;;  %v268_v58 = vsub.f32 0.0, %v260_v56 }
 0x2d0   :  { %363 = vpow2.f32 %v272_v57  ;;  %v270_v59 = vmul.f32 1.442695, %v268_v58 }
 0x2d2   :  { %365 = vpow2.f32 %v270_v59 }
 0x2dd   :  { %v364_v60 = vpop.eup %363 }
 0x2de   :  { %v275_v61 = vadd.f32 1.0, %v364_v60 }
 0x2df   :  { %v366_v62 = vpop.eup %365 }
 0x2e0   :  { %367 = vrcp.f32 %v275_v61  ;;  %v274_v63 = vadd.f32 1.0, %v366_v62 }
 0x2e2   :  { %369 = vrcp.f32 %v274_v63 }
 0x2ed   :  { %v368_v0 = vpop.eup %367 }
 0x2ee   :  { %279 = vst.msk [vmem:[#allocation2 + $0x8] sm:$0xff] %vm40_vm0, %v368_v0 }
 0x2ef   :  { %v370_v1 = vpop.eup %369 }
 0x2f0   :  { %278 = vst.msk [vmem:[#allocation2] sm:$0xff] %vm40_vm0, %v370_v1 }
 0x2f1   :  { %382 = shalt.err (!%p379_p4)
}
 0x2f2   :  { %s394_s14 = smov 128   ;;  %s395_s0 = smov 8  }
 0x2f3   :  { %291 = dma.vmem_to_hbm [thread:$0]  %s286_s4, 256, %s516_s7, [#allocation3], %s394_s14, %s394_s14, %s395_s0  }
 0x2f4   :  { %391 = dma.done.wait [#allocation3], 256  }
 0x2f5   :  { %392 = vsyncadd [#allocation3], 4294967040 }
 0x2f6   :  { %295 = vsyncpa [#allocation3], 1 }

</bundles_post_ra>
